<compile_context>
chip_gen: v5e
topology: v5e:2x2
jax: 0.10.0
libtpu: 0.0.40
codegen_flags: <defaults>
</compile_context>

<pallas_src>
import functools

import jax
import jax.numpy as jnp
from jax.experimental import pallas as pl
from jax.experimental.pallas import tpu as pltpu


def _variance_loss_kernel(tt_ref, out_ref, acc_ref, *, k, tm, tn):
    i = pl.program_id(0)          # row-strip index ("parallel")
    j = pl.program_id(1)          # column-tile index (reduction, "arbitrary")

    # Reset the per-strip accumulator at the start of each strip.
    @pl.when(j == 0)
    def _init():
        acc_ref[...] = jnp.zeros_like(acc_ref)

    x = tt_ref[...].astype(jnp.float32)
    x2 = x * x

    row0 = i * tm
    col0 = j * tn
    # Tile touches the diagonal iff its row range and column range overlap.
    touches_diag = jnp.logical_and(row0 < col0 + tn, col0 < row0 + tm)
    # Tile contains padded (out-of-range) rows/cols of a remainder block.
    touches_pad = jnp.logical_or(row0 + tm > k, col0 + tn > k)
    needs_mask = jnp.logical_or(touches_diag, touches_pad)

    # Masked accumulate only on diagonal / edge tiles.
    @pl.when(needs_mask)
    def _masked():
        r = row0 + jax.lax.broadcasted_iota(jnp.int32, x2.shape, 0)
        c = col0 + jax.lax.broadcasted_iota(jnp.int32, x2.shape, 1)
        keep = jnp.logical_and(r != c, jnp.logical_and(r < k, c < k))
        acc_ref[...] += jnp.where(keep, x2, 0.0)

    # Interior tiles: plain multiply-accumulate, no iota/compare/select.
    @pl.when(jnp.logical_not(needs_mask))
    def _plain():
        acc_ref[...] += x2

    # Single cross-lane reduce per strip; write a lane-dense partial.
    @pl.when(j == pl.num_programs(1) - 1)
    def _finalize():
        total = jnp.sum(acc_ref[...])
        out_ref[...] = jnp.broadcast_to(total, out_ref.shape)


def variance_loss(tt: jax.Array, *, tile_m: int = 512, tile_n: int = 1024) -> jax.Array:
    """Pallas implementation of VarianceLoss.forward (returns a scalar f32)."""
    assert tt.ndim == 2 and tt.shape[0] == tt.shape[1], "tt must be (K, K)"
    k = tt.shape[0]

    # Clamp tiles to the matrix size; clamped tiles equal the full dim, larger
    # tiles stay (8,128)-aligned (512 % 8 == 0, 1024 % 128 == 0).
    tm = min(tile_m, k)
    tn = min(tile_n, k)
    gm = pl.cdiv(k, tm)
    gn = pl.cdiv(k, tn)

    kernel = functools.partial(_variance_loss_kernel, k=k, tm=tm, tn=tn)

    in_tile_bytes = tm * tn * tt.dtype.itemsize
    acc_bytes = tm * tn * 4
    # double-buffered input tile + resident f32 accumulator + headroom
    vmem_limit = int(2 * in_tile_bytes + acc_bytes + (8 << 20))

    partials = pl.pallas_call(
        kernel,
        out_shape=jax.ShapeDtypeStruct((gm, 1, 128), jnp.float32),
        grid_spec=pltpu.PrefetchScalarGridSpec(
            num_scalar_prefetch=0,
            grid=(gm, gn),
            in_specs=[pl.BlockSpec((tm, tn), lambda i, j: (i, j))],
            out_specs=pl.BlockSpec((1, 1, 128), lambda i, j: (i, 0, 0)),
            scratch_shapes=[pltpu.VMEM((tm, tn), jnp.float32)],
        ),
        compiler_params=pltpu.CompilerParams(
            dimension_semantics=("parallel", "arbitrary"),
            vmem_limit_bytes=vmem_limit,
        ),
        cost_estimate=pl.CostEstimate(
            flops=2 * k * k,
            transcendentals=0,
            bytes_accessed=k * k * tt.dtype.itemsize + gm * 128 * 4,
        ),
    )(tt)

    # Sum the per-strip partials and apply the MSE mean (divide by K*K).
    return jnp.sum(partials[:, 0, 0]) / jnp.float32(k * k)


def _reference(tt: jax.Array) -> jax.Array:
    k = tt.shape[0]
    mask = 1.0 - jnp.eye(k, dtype=jnp.float32)
    return jnp.mean((mask * tt.astype(jnp.float32)) ** 2)


if __name__ == "__main__":
    # Small shape consistent with the module: tt is a (K, K) matrix, K = 8.
    key = jax.random.PRNGKey(0)
    K = 8
    tt = jax.random.normal(key, (K, K), dtype=jnp.float32)

    loss = variance_loss(tt)
    jax.block_until_ready(loss)
    ref = _reference(tt)
    assert jnp.allclose(loss, ref, rtol=1e-6, atol=1e-6), (loss, ref)

    # Also exercise the gridded / remainder-tile / multi-strip path (still cheap).
    K2 = 1300  # not a multiple of the tile sizes -> padded edge tiles are masked
    tt2 = jax.random.normal(jax.random.PRNGKey(1), (K2, K2), dtype=jnp.float32)
    loss2 = variance_loss(tt2)
    jax.block_until_ready(loss2)
    ref2 = _reference(tt2)
    assert jnp.allclose(loss2, ref2, rtol=1e-4, atol=1e-6), (loss2, ref2)

    print("KERNEL_OK")
</pallas_src>

<mosaic_0001>
module attributes {stable_mosaic.version = 11 : i64} {
  func.func @_variance_loss_kernel(%arg0: i32, %arg1: i32, %arg2: memref<8x8xf32, #tpu.memory_space<vmem>>, %arg3: memref<1x1x128xf32, #tpu.memory_space<vmem>>, %arg4: memref<8x8xf32, #tpu.memory_space<vmem>>) attributes {dimension_semantics = [#tpu.dimension_semantics<parallel>, #tpu.dimension_semantics<arbitrary>], iteration_bounds = array<i64: 1, 1>, scalar_prefetch = 0 : i64, scratch_operands = 1 : i64, tpu.core_type = #tpu.core_type<tc>, window_params = [{transform_indices = @transform_0, window_bounds = array<i64: 8, 8>}, {transform_indices = @transform_1, window_bounds = array<i64: 1, 1, 128>}]} {
    %c0_i32 = arith.constant 0 : i32
    %0 = arith.cmpi eq, %arg1, %c0_i32 : i32
    %1 = arith.extui %0 : i1 to i32
    %c0_i32_0 = arith.constant 0 : i32
    %2 = arith.cmpi ne, %1, %c0_i32_0 : i32
    scf.if %2 {
      %cst = arith.constant 0.000000e+00 : f32
      %26 = vector.broadcast %cst : f32 to vector<8x8xf32>
      %c0_13 = arith.constant 0 : index
      %c0_14 = arith.constant 0 : index
      %27 = vector.load %arg4[%c0_13, %c0_14] : memref<8x8xf32, #tpu.memory_space<vmem>>, vector<8x8xf32>
      tpu.vector_store %arg4[%c0_13, %c0_14], %26 {strides = array<i32>} : memref<8x8xf32, #tpu.memory_space<vmem>>, vector<8x8xf32>,
    } else {
    }
    %c0 = arith.constant 0 : index
    %c0_1 = arith.constant 0 : index
    %3 = vector.load %arg2[%c0, %c0_1] : memref<8x8xf32, #tpu.memory_space<vmem>>, vector<8x8xf32>
    %4 = arith.mulf %3, %3 : vector<8x8xf32>
    %c8_i32 = arith.constant 8 : i32
    %5 = arith.muli %arg0, %c8_i32 : i32
    %c8_i32_2 = arith.constant 8 : i32
    %6 = arith.muli %arg1, %c8_i32_2 : i32
    %c8_i32_3 = arith.constant 8 : i32
    %7 = arith.addi %6, %c8_i32_3 : i32
    %8 = arith.cmpi slt, %5, %7 : i32
    %c8_i32_4 = arith.constant 8 : i32
    %9 = arith.addi %5, %c8_i32_4 : i32
    %10 = arith.cmpi slt, %6, %9 : i32
    %11 = arith.andi %8, %10 : i1
    %c8_i32_5 = arith.constant 8 : i32
    %12 = arith.addi %5, %c8_i32_5 : i32
    %c8_i32_6 = arith.constant 8 : i32
    %13 = arith.cmpi sgt, %12, %c8_i32_6 : i32
    %c8_i32_7 = arith.constant 8 : i32
    %14 = arith.addi %6, %c8_i32_7 : i32
    %c8_i32_8 = arith.constant 8 : i32
    %15 = arith.cmpi sgt, %14, %c8_i32_8 : i32
    %16 = arith.ori %13, %15 : i1
    %17 = arith.ori %11, %16 : i1
    %18 = arith.extui %17 : i1 to i32
    %c0_i32_9 = arith.constant 0 : i32
    %19 = arith.cmpi ne, %18, %c0_i32_9 : i32
    scf.if %19 {
      %26 = tpu.iota {dimensions = array<i32: 0>} : vector<8x8xi32>
      %27 = vector.broadcast %5 : i32 to vector<8x8xi32>
      %28 = arith.addi %27, %26 : vector<8x8xi32>
      %29 = tpu.iota {dimensions = array<i32: 1>} : vector<8x8xi32>
      %30 = vector.broadcast %6 : i32 to vector<8x8xi32>
      %31 = arith.addi %30, %29 : vector<8x8xi32>
      %32 = arith.cmpi ne, %28, %31 : vector<8x8xi32>
      %c8_i32_13 = arith.constant 8 : i32
      %33 = vector.broadcast %c8_i32_13 : i32 to vector<8x8xi32>
      %34 = arith.cmpi slt, %28, %33 : vector<8x8xi32>
      %c8_i32_14 = arith.constant 8 : i32
      %35 = vector.broadcast %c8_i32_14 : i32 to vector<8x8xi32>
      %36 = arith.cmpi slt, %31, %35 : vector<8x8xi32>
      %37 = arith.andi %34, %36 : vector<8x8xi1>
      %38 = arith.andi %32, %37 : vector<8x8xi1>
      %c0_15 = arith.constant 0 : index
      %c0_16 = arith.constant 0 : index
      %39 = vector.load %arg4[%c0_15, %c0_16] : memref<8x8xf32, #tpu.memory_space<vmem>>, vector<8x8xf32>
      %cst = arith.constant 0.000000e+00 : f32
      %40 = vector.broadcast %cst : f32 to vector<8x8xf32>
      %41 = arith.select %38, %4, %40 : vector<8x8xi1>, vector<8x8xf32>
      %42 = arith.addf %39, %41 : vector<8x8xf32>
      %c0_17 = arith.constant 0 : index
      %c0_18 = arith.constant 0 : index
      %43 = vector.load %arg4[%c0_17, %c0_18] : memref<8x8xf32, #tpu.memory_space<vmem>>, vector<8x8xf32>
      tpu.vector_store %arg4[%c0_17, %c0_18], %42 {strides = array<i32>} : memref<8x8xf32, #tpu.memory_space<vmem>>, vector<8x8xf32>,
    } else {
    }
    %true = arith.constant true
    %20 = arith.xori %17, %true : i1
    %21 = arith.extui %20 : i1 to i32
    %c0_i32_10 = arith.constant 0 : i32
    %22 = arith.cmpi ne, %21, %c0_i32_10 : i32
    scf.if %22 {
      %c0_13 = arith.constant 0 : index
      %c0_14 = arith.constant 0 : index
      %26 = vector.load %arg4[%c0_13, %c0_14] : memref<8x8xf32, #tpu.memory_space<vmem>>, vector<8x8xf32>
      %27 = arith.addf %26, %4 : vector<8x8xf32>
      %c0_15 = arith.constant 0 : index
      %c0_16 = arith.constant 0 : index
      %28 = vector.load %arg4[%c0_15, %c0_16] : memref<8x8xf32, #tpu.memory_space<vmem>>, vector<8x8xf32>
      tpu.vector_store %arg4[%c0_15, %c0_16], %27 {strides = array<i32>} : memref<8x8xf32, #tpu.memory_space<vmem>>, vector<8x8xf32>,
    } else {
    }
    %c0_i32_11 = arith.constant 0 : i32
    %23 = arith.cmpi eq, %arg1, %c0_i32_11 : i32
    %24 = arith.extui %23 : i1 to i32
    %c0_i32_12 = arith.constant 0 : i32
    %25 = arith.cmpi ne, %24, %c0_i32_12 : i32
    scf.if %25 {
      %c0_13 = arith.constant 0 : index
      %c0_14 = arith.constant 0 : index
      %26 = vector.load %arg4[%c0_13, %c0_14] : memref<8x8xf32, #tpu.memory_space<vmem>>, vector<8x8xf32>
      %27 = vector.shape_cast %26 : vector<8x8xf32> to vector<1x8x8xf32>
      %cst = arith.constant dense<0.000000e+00> : vector<1xf32>
      %28 = vector.multi_reduction <add>, %27, %cst [1, 2] : vector<1x8x8xf32> to vector<1xf32>
      %29 = vector.shape_cast %28 : vector<1xf32> to vector<1x1x1xf32>
      %30 = vector.extract %29[0, 0, 0] : f32 from vector<1x1x1xf32>
      %31 = vector.broadcast %30 : f32 to vector<1x1x128xf32>
      %c0_15 = arith.constant 0 : index
      %c0_16 = arith.constant 0 : index
      %c0_17 = arith.constant 0 : index
      %32 = vector.load %arg3[%c0_15, %c0_16, %c0_17] : memref<1x1x128xf32, #tpu.memory_space<vmem>>, vector<1x1x128xf32>
      tpu.vector_store %arg3[%c0_15, %c0_16, %c0_17], %31 {strides = array<i32>} : memref<1x1x128xf32, #tpu.memory_space<vmem>>, vector<1x1x128xf32>,
    } else {
    }
    return
  }
  func.func @transform_0(%arg0: i32, %arg1: i32) -> (i32, i32) {
    %c0_i32 = arith.constant 0 : i32
    return %arg0, %arg1 : i32, i32
  }
  func.func @transform_1(%arg0: i32, %arg1: i32) -> (i32, i32, i32) {
    %c0_i32 = arith.constant 0 : i32
    %c0_i32_0 = arith.constant 0 : i32
    %c0_i32_1 = arith.constant 0 : i32
    return %arg0, %c0_i32, %c0_i32_0 : i32, i32, i32
  }
}

</mosaic_0001>

<bundles_post_ra>
// kernel: tpu_custom_call.1
= control target key start
LH: loop header
LB: loop body
LE: loop exit
PB: predicated region body
PF: predicated region fallthrough
CT: control target
= control target key end

     0   :  { %6 = vsyncpa [#allocation4], 0  ;;  %s184_s0 = inlined_call_operand.hbm [shape: f32[8,8], index: 0, kind: input, shape index: {}]   ;;  %s185_s1 = inlined_call_operand.hbm [shape: f32[1,1,128], index: 1, kind: output, shape index: {}]  }
   0x1   :  { %7 = vsyncpa [#allocation5], 0  ;;  %s13_s8 = sshll.u32 %s184_s0, 4  ;;  %s162_s9 = smov [#allocation3]   ;;  %s14_s8 = int_to_ptr.hbm [resolvable:$true] %s13_s8 }
   0x2   :  { %s15_s10 = sshll.u32 %s162_s9, 4  ;;  %s16_s10 = int_to_ptr.vmem [resolvable:$true] %s15_s10 }
   0x3   :  { %18 = dma.hbm_to_vmem [thread:$0]  %s14_s8, 128, %s16_s10, [#allocation4]  }
   0x4   :  { %158 = dma.done.wait [#allocation4], 128  }
   0x5   :  { %159 = vsyncadd [#allocation4], 4294967168  ;;  %vm27_vm0 = vcmask 64512   ;;  %v46_v0 = vlaneseq  ;;  %v163_v1 = vmov 0.0   ;;  %v29_v4 = vld [vmem:[#allocation3] sm:$0xff]  ;;  %s164_s0 = smov [#allocation6]  }
   0x6   :  { %28 = vst.msk [vmem:[#allocation2] sm:$0xff] %vm27_vm0, %v163_v1  ;;  %v30_v5 = vmul.f32 %v29_v4, %v29_v4  ;;  %s93_s11 = sshll.u32 %s164_s0, 4  ;;  %s95_s14 = sshll.u32 %s185_s1, 4  ;;  %s94_s11 = int_to_ptr.vmem [resolvable:$true] %s93_s11  ;;  %s96_s14 = int_to_ptr.hbm [resolvable:$true] %s95_s14 }
   0x7   :  { %v47_v2 = vshrl.u32 %v46_v0, 7  ;;  %v51_v3 = vand.u32 127, %v46_v0 }
   0x9   :  { %vm54_vm1 = vcmp.ne.s32.totalorder %v47_v2, %v51_v3  ;;  %vm56_vm2 = vcmp.lt.s32.totalorder %v51_v3, 8 }
   0xa   :  { %vm58_vm3 = vmand %vm54_vm1, %vm56_vm2 }
   0xb   :  { %v60_v7 = vsel %vm58_vm3, %v30_v5, 0.0 }
   0xd   :  { %v59_v6 = vld [vmem:[#allocation2] sm:$0xff] }
   0xe   :  { %v61_v8 = vadd.f32 %v60_v7, %v59_v6 }
  0x10   :  { %63 = vst.msk [vmem:[#allocation2] sm:$0xff] %vm27_vm0, %v61_v8 }
  0x17   :  { %v74_v9 = vld [vmem:[#allocation2] sm:$0xff] }
  0x18   :  { %v76_v10 = vsel %vm27_vm0, %v74_v9, 0.0 }
  0x19   :  { %77 = vadd.xlane.f32.xlu0 %v76_v10 }
  0x8c   :  { %v78_v11 = vpop.xlane.xlu0 %77 }
  0x8d   :  { %v79_v12 = vrot.slane %v78_v11, 4 }
  0x8f   :  { %v80_v13 = vadd.f32 %v79_v12, %v78_v11 }
  0x91   :  { %v81_v14 = vrot.slane %v80_v13, 2 }
  0x93   :  { %v82_v15 = vadd.f32 %v81_v14, %v80_v13 }
  0x95   :  { %v83_v16 = vrot.slane %v82_v15, 1 }
  0x97   :  { %v84_v17 = vadd.f32 %v83_v16, %v82_v15 }
  0x99   :  { %105 = vpush %v84_v17 }
  0xca   :  { %s106_s15 = spop %105 }
  0xcb   :  { %v86_v18 = vstv %s106_s15 }
  0xcc   :  { %87 = vst [vmem:[#allocation6] sm:$0x1] %v86_v18 }
  0xcd   :  { %98 = dma.vmem_to_hbm [thread:$0]  %s94_s11, 16, %s96_s14, [#allocation5]  }
  0xce   :  { %160 = dma.done.wait [#allocation5], 16  }
  0xcf   :  { %161 = vsyncadd [#allocation5], 4294967280 }
  0xd0   :  { %103 = vsyncpa [#allocation4], 1 }
  0xd1   :  { %104 = vsyncpa [#allocation5], 1 }

</bundles_post_ra>
